<compile_context>
chip_gen: v5e
topology: v5e:2x2
jax: 0.10.0
libtpu: 0.0.40
codegen_flags: <defaults>
</compile_context>

<pallas_src>
import jax
import jax.numpy as jnp
from jax.experimental import pallas as pl
from jax.experimental.pallas import tpu as pltpu

LANES = 128
SUBLANES = 8
MAX_BLOCK_BYTES = 2 << 20   # ~2 MiB per input block (x2 double-buffered)
NUM_CORES = 2               # leading "parallel" axis; helps v7x, harmless on 1-TC chips


# --------------------------------------------------------------------------
# Fused per-element-loss + masked partial-sum kernel
# --------------------------------------------------------------------------
def _make_gan_loss_kernel(use_mse, tile_rows, steps_per_core, n_valid, needs_mask):
    """use_mse: static MSE-vs-BCE flag.  n_valid: valid element count.
    needs_mask: static flag, True iff any grid block extends past n_valid."""
    block_elems = tile_rows * LANES

    def kernel(t_ref, x_ref, o_ref):
        c = pl.program_id(0)          # core split (parallel)
        i = pl.program_id(1)          # reduction steps (arbitrary)

        @pl.when(i == 0)
        def _init():
            o_ref[...] = jnp.zeros_like(o_ref)

        x = x_ref[...].astype(jnp.float32)   # stream native dtype, up-cast per tile
        t = t_ref[0]                         # scalar target value from SMEM

        if use_mse:
            d = x - t
            per = d * d
        else:
            # numerically stable BCEWithLogitsLoss against a constant target:
            #   max(x,0) - x*t + log1p(exp(-|x|))
            per = (jnp.maximum(x, 0.0) - x * t
                   + jnp.log1p(jnp.exp(-jnp.abs(x))))

        def accumulate(vals):
            # (tile_rows,128) -> (tile_rows//8, 8, 128), sum over axis 0:
            # pure VPU adds into the resident (1,8,128) VMEM output block.
            o_ref[...] += vals.reshape(tile_rows // SUBLANES, SUBLANES, LANES
                                       ).sum(axis=0)[None]

        if needs_mask:                        # only emitted when padding exists
            g = c * steps_per_core + i        # global tile index (unclamped)
            is_full = (g + 1) * block_elems <= n_valid

            @pl.when(is_full)                 # interior tiles: no mask work
            def _full():
                accumulate(per)

            @pl.when(jnp.logical_not(is_full))  # boundary / overhang tiles only
            def _tail():
                row = jax.lax.broadcasted_iota(jnp.int32, per.shape, 0)
                lane = jax.lax.broadcasted_iota(jnp.int32, per.shape, 1)
                gidx = (g * tile_rows + row) * LANES + lane
                accumulate(jnp.where(gidx < n_valid, per, 0.0))
        else:
            accumulate(per)

    return kernel


# --------------------------------------------------------------------------
# Public wrapper (mirrors GANLoss.forward)
# --------------------------------------------------------------------------
def gan_loss(x, target_is_real, use_lsgan=None,
             real_label=1.0, fake_label=0.0):
    """x: any-shape logits/predictions (f32 / bf16 / f16).
    target_is_real: bool (python or traced).
    use_lsgan: static; not-None -> MSELoss, None -> BCEWithLogitsLoss."""
    n = x.size
    xf = jnp.ravel(x)                            # native dtype: no host astype copy
    itemsize = xf.dtype.itemsize
    sub_mult = max(SUBLANES, 32 // itemsize)     # min sublane tile: 8 f32 / 16 bf16 / 32 int8

    rows = -(-n // LANES)
    if rows < sub_mult:
        rows = sub_mult                           # tiny inputs: one minimum tile
    if rows * LANES != n:                         # minimal pad, only at the lane edge
        xf = jnp.pad(xf, (0, rows * LANES - n))
    x2d = xf.reshape(rows, LANES)                 # lane-dense (rows,128) layout

    cap = max(sub_mult, (MAX_BLOCK_BYTES // (LANES * itemsize)) // sub_mult * sub_mult)
    tile_rows = min(cap, -(-rows // sub_mult) * sub_mult)

    n_tiles = -(-rows // tile_rows)
    num_cores = NUM_CORES if n_tiles >= NUM_CORES else 1
    steps_per_core = -(-n_tiles // num_cores)
    needs_mask = (num_cores * steps_per_core * tile_rows * LANES) != n
    last_tile = n_tiles - 1

    t = jnp.where(target_is_real, real_label, fake_label)
    t = t.astype(jnp.float32).reshape(1)

    kernel = _make_gan_loss_kernel(use_lsgan is not None, tile_rows,
                                   steps_per_core, n, needs_mask)

    partials = pl.pallas_call(
        kernel,
        out_shape=jax.ShapeDtypeStruct((num_cores, SUBLANES, LANES), jnp.float32),
        grid=(num_cores, steps_per_core),
        in_specs=[
            pl.BlockSpec(memory_space=pltpu.MemorySpace.SMEM),        # target scalar
            pl.BlockSpec(                                             # data tile
                (tile_rows, LANES),
                lambda c, i: (jnp.minimum(c * steps_per_core + i, last_tile), 0)),
        ],
        out_specs=pl.BlockSpec((1, SUBLANES, LANES), lambda c, i: (c, 0, 0)),
        compiler_params=pltpu.CompilerParams(
            dimension_semantics=("parallel", "arbitrary")),
    )(t, x2d)

    # tiny final combine (<= 2*8*128 f32) + mean scale in the wrapper
    return jnp.sum(partials) * jnp.float32(1.0 / n)


# --------------------------------------------------------------------------
def _close(a, b, tol=1e-4):
    a, b = float(a), float(b)
    return abs(a - b) <= tol * max(1.0, abs(b))


if __name__ == "__main__":
    key = jax.random.PRNGKey(0)
    x = jax.random.normal(key, (2, 4, 16, 16), jnp.float32)   # NCHW discriminator logits

    loss_fn = jax.jit(gan_loss, static_argnames=("use_lsgan",))

    # LSGAN (MSE) mode, real target
    l_mse = loss_fn(x, True, use_lsgan=True)
    # default (BCE-with-logits) mode, fake target
    l_bce = loss_fn(x, False, use_lsgan=None)
    # bf16 input streamed natively, up-cast in-kernel
    xb = x.astype(jnp.bfloat16)
    l_bf16 = loss_fn(xb, True, use_lsgan=True)
    # ragged size (not a multiple of 128) exercises the in-kernel tail mask
    xr = jax.random.normal(jax.random.PRNGKey(1), (3, 5, 7), jnp.float32)
    l_rag = loss_fn(xr, False, use_lsgan=None)
    # larger input exercises multi-tile accumulation + 2-core split + clamping
    xg = jax.random.normal(jax.random.PRNGKey(2), (3, 8, 256, 256), jnp.float32)
    l_big = loss_fn(xg, True, use_lsgan=None)

    results = jax.block_until_ready((l_mse, l_bce, l_bf16, l_rag, l_big))

    # pure-JAX references
    def bce_ref(v, tv):
        v = v.astype(jnp.float32)
        return jnp.mean(jnp.maximum(v, 0.0) - v * tv + jnp.log1p(jnp.exp(-jnp.abs(v))))

    ref_mse = jnp.mean((x - 1.0) ** 2)
    ref_bce = bce_ref(x, 0.0)
    ref_bf16 = jnp.mean((xb.astype(jnp.float32) - 1.0) ** 2)
    ref_rag = bce_ref(xr, 0.0)
    ref_big = bce_ref(xg, 1.0)

    assert _close(l_mse, ref_mse), (float(l_mse), float(ref_mse))
    assert _close(l_bce, ref_bce), (float(l_bce), float(ref_bce))
    assert _close(l_bf16, ref_bf16), (float(l_bf16), float(ref_bf16))
    assert _close(l_rag, ref_rag), (float(l_rag), float(ref_rag))
    assert _close(l_big, ref_big), (float(l_big), float(ref_big))
    assert all(bool(jnp.isfinite(r)) for r in results)

    print("KERNEL_OK")
</pallas_src>

<mosaic_0001>
module attributes {stable_mosaic.version = 11 : i64} {
  func.func @kernel(%arg0: i32, %arg1: i32, %arg2: memref<1xf32, #tpu.memory_space<smem>>, %arg3: memref<16x128xf32, #tpu.memory_space<vmem>>, %arg4: memref<1x8x128xf32, #tpu.memory_space<vmem>>) attributes {dimension_semantics = [#tpu.dimension_semantics<parallel>, #tpu.dimension_semantics<arbitrary>], iteration_bounds = array<i64: 1, 1>, scalar_prefetch = 0 : i64, scratch_operands = 0 : i64, tpu.core_type = #tpu.core_type<tc>, window_params = [{transform_indices = @transform_0, window_bounds = array<i64: 1>}, {transform_indices = @transform_1, window_bounds = array<i64: 16, 128>}, {transform_indices = @transform_2, window_bounds = array<i64: 1, 8, 128>}]} {
    %c0_i32 = arith.constant 0 : i32
    %0 = arith.cmpi eq, %arg1, %c0_i32 : i32
    %1 = arith.extui %0 : i1 to i32
    %c0_i32_0 = arith.constant 0 : i32
    %2 = arith.cmpi ne, %1, %c0_i32_0 : i32
    scf.if %2 {
      %cst_9 = arith.constant 0.000000e+00 : f32
      %14 = vector.broadcast %cst_9 : f32 to vector<1x8x128xf32>
      %c0_10 = arith.constant 0 : index
      %c0_11 = arith.constant 0 : index
      %c0_12 = arith.constant 0 : index
      %15 = vector.load %arg4[%c0_10, %c0_11, %c0_12] : memref<1x8x128xf32, #tpu.memory_space<vmem>>, vector<1x8x128xf32>
      tpu.vector_store %arg4[%c0_10, %c0_11, %c0_12], %14 {strides = array<i32>} : memref<1x8x128xf32, #tpu.memory_space<vmem>>, vector<1x8x128xf32>,
    } else {
    }
    %c0 = arith.constant 0 : index
    %c0_1 = arith.constant 0 : index
    %3 = vector.load %arg3[%c0, %c0_1] : memref<16x128xf32, #tpu.memory_space<vmem>>, vector<16x128xf32>
    %c0_2 = arith.constant 0 : index
    %4 = memref.load %arg2[%c0_2] : memref<1xf32, #tpu.memory_space<smem>>
    %5 = vector.broadcast %4 : f32 to vector<16x128xf32>
    %6 = arith.subf %3, %5 : vector<16x128xf32>
    %7 = arith.mulf %6, %6 : vector<16x128xf32>
    %c0_3 = arith.constant 0 : index
    %c0_4 = arith.constant 0 : index
    %c0_5 = arith.constant 0 : index
    %8 = vector.load %arg4[%c0_3, %c0_4, %c0_5] : memref<1x8x128xf32, #tpu.memory_space<vmem>>, vector<1x8x128xf32>
    %9 = vector.shape_cast %7 : vector<16x128xf32> to vector<2x8x128xf32>
    %cst = arith.constant dense<0.000000e+00> : vector<8x128xf32>
    %10 = vector.multi_reduction <add>, %9, %cst [0] : vector<2x8x128xf32> to vector<8x128xf32>
    %11 = vector.shape_cast %10 : vector<8x128xf32> to vector<1x8x128xf32>
    %12 = arith.addf %8, %11 : vector<1x8x128xf32>
    %c0_6 = arith.constant 0 : index
    %c0_7 = arith.constant 0 : index
    %c0_8 = arith.constant 0 : index
    %13 = vector.load %arg4[%c0_6, %c0_7, %c0_8] : memref<1x8x128xf32, #tpu.memory_space<vmem>>, vector<1x8x128xf32>
    tpu.vector_store %arg4[%c0_6, %c0_7, %c0_8], %12 {strides = array<i32>} : memref<1x8x128xf32, #tpu.memory_space<vmem>>, vector<1x8x128xf32>,
    return
  }
  func.func @transform_0(%arg0: i32, %arg1: i32) -> i32 {
    %c0_i32 = arith.constant 0 : i32
    %c0_i32_0 = arith.constant 0 : i32
    return %c0_i32 : i32
  }
  func.func @transform_1(%arg0: i32, %arg1: i32) -> (i32, i32) {
    %c1_i32 = arith.constant 1 : i32
    %0 = arith.muli %arg0, %c1_i32 : i32
    %1 = arith.addi %0, %arg1 : i32
    %c0_i32 = arith.constant 0 : i32
    %2 = arith.minsi %1, %c0_i32 : i32
    %c0_i32_0 = arith.constant 0 : i32
    %c0_i32_1 = arith.constant 0 : i32
    return %2, %c0_i32_0 : i32, i32
  }
  func.func @transform_2(%arg0: i32, %arg1: i32) -> (i32, i32, i32) {
    %c0_i32 = arith.constant 0 : i32
    %c0_i32_0 = arith.constant 0 : i32
    %c0_i32_1 = arith.constant 0 : i32
    return %arg0, %c0_i32, %c0_i32_0 : i32, i32, i32
  }
}

</mosaic_0001>

<bundles_post_ra>
// kernel: gan_loss.1
= control target key start
LH: loop header
LB: loop body
LE: loop exit
PB: predicated region body
PF: predicated region fallthrough
CT: control target
= control target key end

     0   :  { %s99_s0 = inlined_call_operand.<no memory space> [shape: f32[1], index: 0, kind: input, shape index: {}]   ;;  %s100_s1 = inlined_call_operand.vmem [shape: f32[16,128], index: 1, kind: input, shape index: {}]   ;;  %s101_s2 = inlined_call_operand.vmem [shape: f32[1,8,128], index: 2, kind: output, shape index: {}]  }
   0x1   :  { %v49_v0 = vld [vmem:[%s100_s1] sm:$0xff]  ;;  %v50_v1 = vld [vmem:[%s100_s1 + $0x8] sm:$0xff]  ;;  %v52_v2 = vstv %s99_s0 }
   0x2   :  { %v53_v3 = vsub.f32 %v49_v0, %v52_v2  ;;  %v54_v4 = vsub.f32 %v50_v1, %v52_v2 }
   0x4   :  { %v55_v5 = vmul.f32 %v53_v3, %v53_v3  ;;  %v56_v6 = vmul.f32 %v54_v4, %v54_v4 }
   0x6   :  { %v58_v7 = vadd.f32 %v56_v6, %v55_v5 }
   0x8   :  { %60 = vst [vmem:[%s101_s2] sm:$0xff] %v58_v7 }

</bundles_post_ra>
